<compile_context>
chip_gen: v7x
topology: tpu7x:2x2x1
jax: 0.10.0
libtpu: 0.0.40
codegen_flags: <defaults>
</compile_context>

<pallas_src>
import functools

import jax
import jax.numpy as jnp
from jax.experimental import pallas as pl
from jax.experimental.pallas import tpu as pltpu


def vib_kernel(x_ref, eps_ref, w1_ref, w2_ref, wc_ref, b_ref,
               mu_ref, std_ref, logits_ref, hzx_ref, *,
               hidden_size, output_size):
    H = hidden_size
    K = H // 2
    O = output_size

    x = x_ref[...]
    b = b_ref[...]                      # (1, 2H+O) = [b1 | b2 | bc]
    b1 = b[:, 0:H]
    b2 = b[:, H:2 * H]
    bc = b[:, 2 * H:2 * H + O]

    # --- encoder: Linear -> ReLU -> Linear (single merged (H,H) dot) ---
    h = jnp.dot(x, w1_ref[...], preferred_element_type=jnp.float32) + b1
    h = jnp.maximum(h, 0.0)
    zp = jnp.dot(h, w2_ref[...], preferred_element_type=jnp.float32) + b2

    mu = zp[:, :K]
    std = jnp.logaddexp(zp[:, K:] + 0.57, 0.0)     # softplus(x + 0.57), beta=1

    # --- reparameterization trick: z = mu + eps * std ---
    eps = eps_ref[...]
    z = mu + eps * std

    # --- h_z_x = -log N(z; mu, diag(std^2)) summed over K ---
    # Since z - mu = eps * std, (z - mu)^2 / std^2 == eps^2 exactly, hence:
    #   h_z_x = sum_k (0.5*eps^2 + log std) + 0.5*K*log(2*pi)
    hzx = (jnp.sum(0.5 * eps * eps + jnp.log(std), axis=-1, keepdims=True)
           + 0.5 * K * jnp.log(2.0 * jnp.pi))

    # --- classifier logits ---
    logits = jnp.dot(z, wc_ref[...], preferred_element_type=jnp.float32) + bc

    mu_ref[...] = mu
    std_ref[...] = std
    logits_ref[...] = logits
    hzx_ref[...] = hzx


@functools.partial(jax.jit,
                   static_argnames=("hidden_size", "output_size", "block_b"))
def vib_forward(x, eps, params, *, hidden_size, output_size, block_b=256):
    """params = prepare_vib_params(...) output: (w1, w2, wc, b_all)."""
    B = x.shape[0]
    H = hidden_size
    K = H // 2
    O = output_size
    w1, w2, wc, b_all = params

    kernel = functools.partial(vib_kernel, hidden_size=H, output_size=O)

    out_shapes = (
        jax.ShapeDtypeStruct((B, K), jnp.float32),   # mu
        jax.ShapeDtypeStruct((B, K), jnp.float32),   # std
        jax.ShapeDtypeStruct((B, O), jnp.float32),   # logits
        jax.ShapeDtypeStruct((B, 1), jnp.float32),   # h_z_x
    )

    cost = pl.CostEstimate(
        flops=2 * B * H * H * 2 + 2 * B * K * O + 10 * B * K,
        transcendentals=3 * B * K,
        bytes_accessed=4 * (B * (H + K) + 2 * H * H + K * O + (2 * H + O)
                            + B * (2 * K + O + 1)),
    )

    if B >= 2 * block_b and B % block_b == 0:
        # Batch-tiled grid: sharded across TensorCores on v7x, pipelined x/eps DMAs.
        tb = block_b
        nb = B // tb
        mu, std, logits, hzx = pl.pallas_call(
            kernel,
            out_shape=out_shapes,
            grid=(nb,),
            in_specs=[
                pl.BlockSpec((tb, H), lambda i: (i, 0)),          # x
                pl.BlockSpec((tb, K), lambda i: (i, 0)),          # eps
                pl.BlockSpec((H, H), lambda i: (0, 0)),           # w1
                pl.BlockSpec((H, H), lambda i: (0, 0)),           # w2
                pl.BlockSpec((K, O), lambda i: (0, 0)),           # wc
                pl.BlockSpec((1, 2 * H + O), lambda i: (0, 0)),   # biases
            ],
            out_specs=(
                pl.BlockSpec((tb, K), lambda i: (i, 0)),
                pl.BlockSpec((tb, K), lambda i: (i, 0)),
                pl.BlockSpec((tb, O), lambda i: (i, 0)),
                pl.BlockSpec((tb, 1), lambda i: (i, 0)),
            ),
            compiler_params=pltpu.CompilerParams(
                dimension_semantics=("parallel",)),
            cost_estimate=cost,
        )(x, eps, w1, w2, wc, b_all)
    else:
        # Tiny batch: everything fits one VMEM-resident block, no grid overhead.
        vmem = pl.BlockSpec(memory_space=pltpu.MemorySpace.VMEM)
        mu, std, logits, hzx = pl.pallas_call(
            kernel,
            out_shape=out_shapes,
            in_specs=[vmem] * 6,
            out_specs=(vmem, vmem, vmem, vmem),
            cost_estimate=cost,
        )(x, eps, w1, w2, wc, b_all)

    # Match the PyTorch module's outputs: (mu, std), h_z_x (B,), logits (1, B, O).
    return (mu, std), hzx[:, 0], logits[None, :, :]


def prepare_vib_params(raw_params):
    """One-time parameter prep (outside the per-call jitted wrapper)."""
    w1, b1, w2, b2, wc, bc = raw_params
    b_all = jnp.concatenate([b1, b2, bc], axis=1)    # (1, 2H+O)
    return (w1, w2, wc, b_all)


def xavier_uniform(key, shape, gain):
    fan_in, fan_out = shape
    bound = gain * jnp.sqrt(6.0 / (fan_in + fan_out))
    return jax.random.uniform(key, shape, jnp.float32, -bound, bound)


def init_vib_params(key, hidden_size, output_size):
    K = hidden_size // 2
    gain = jnp.sqrt(2.0)  # nn.init.calculate_gain('relu')
    k1, k2, k3 = jax.random.split(key, 3)
    # Weights stored (in_features, out_features); biases zero (as in __init__).
    w1 = xavier_uniform(k1, (hidden_size, hidden_size), gain)
    b1 = jnp.zeros((1, hidden_size), jnp.float32)
    w2 = xavier_uniform(k2, (hidden_size, hidden_size), gain)
    b2 = jnp.zeros((1, hidden_size), jnp.float32)
    wc = xavier_uniform(k3, (K, output_size), gain)
    bc = jnp.zeros((1, output_size), jnp.float32)
    return (w1, b1, w2, b2, wc, bc)


def vib_reference(x, eps, raw_params):
    """Pure-JAX reference of the same math (uses the same eps)."""
    w1, b1, w2, b2, wc, bc = raw_params
    K = w1.shape[0] // 2
    h = jnp.maximum(x @ w1 + b1, 0.0)
    zp = h @ w2 + b2
    mu = zp[:, :K]
    std = jnp.logaddexp(zp[:, K:] + 0.57, 0.0)
    z = mu + eps * std
    lp = (-0.5 * ((z - mu) / std) ** 2 - jnp.log(std)
          - 0.5 * jnp.log(2.0 * jnp.pi)).sum(-1)
    logits = (z @ wc + bc)[None]
    return mu, std, -lp, logits


if __name__ == "__main__":
    hidden_size = 32
    output_size = 8
    K = hidden_size // 2

    key = jax.random.PRNGKey(0)
    k_param, k_x, k_eps, k_x2, k_eps2 = jax.random.split(key, 5)

    raw_params = init_vib_params(k_param, hidden_size, output_size)
    params = prepare_vib_params(raw_params)

    # --- small batch: gridless path ---
    batch = 4
    x = jax.random.normal(k_x, (batch, hidden_size), jnp.float32)
    eps = jax.random.normal(k_eps, (batch, K), jnp.float32)

    (mu, std), h_z_x, logits = vib_forward(
        x, eps, params, hidden_size=hidden_size, output_size=output_size)
    jax.block_until_ready((mu, std, h_z_x, logits))

    assert mu.shape == (batch, K) and std.shape == (batch, K)
    assert h_z_x.shape == (batch,)
    assert logits.shape == (1, batch, output_size)

    mu_r, std_r, hzx_r, logits_r = vib_reference(x, eps, raw_params)
    assert jnp.allclose(mu, mu_r, atol=1e-4, rtol=1e-4)
    assert jnp.allclose(std, std_r, atol=1e-4, rtol=1e-4)
    assert jnp.allclose(h_z_x, hzx_r, atol=2e-4, rtol=1e-4)
    assert jnp.allclose(logits, logits_r, atol=1e-4, rtol=1e-4)

    # --- large batch: batch-tiled "parallel" grid path ---
    batch2 = 512
    x2 = jax.random.normal(k_x2, (batch2, hidden_size), jnp.float32)
    eps2 = jax.random.normal(k_eps2, (batch2, K), jnp.float32)

    (mu2, std2), h_z_x2, logits2 = vib_forward(
        x2, eps2, params, hidden_size=hidden_size, output_size=output_size)
    jax.block_until_ready((mu2, std2, h_z_x2, logits2))

    mu2_r, std2_r, hzx2_r, logits2_r = vib_reference(x2, eps2, raw_params)
    assert jnp.allclose(mu2, mu2_r, atol=1e-4, rtol=1e-4)
    assert jnp.allclose(std2, std2_r, atol=1e-4, rtol=1e-4)
    assert jnp.allclose(h_z_x2, hzx2_r, atol=2e-4, rtol=1e-4)
    assert jnp.allclose(logits2, logits2_r, atol=1e-4, rtol=1e-4)

    print("KERNEL_OK")
</pallas_src>

<mosaic_0001>
module attributes {stable_mosaic.version = 11 : i64} {
  func.func @vib_kernel(%arg0: memref<4x32xf32, #tpu.memory_space<vmem>>, %arg1: memref<4x16xf32, #tpu.memory_space<vmem>>, %arg2: memref<32x32xf32, #tpu.memory_space<vmem>>, %arg3: memref<32x32xf32, #tpu.memory_space<vmem>>, %arg4: memref<16x8xf32, #tpu.memory_space<vmem>>, %arg5: memref<1x72xf32, #tpu.memory_space<vmem>>, %arg6: memref<4x16xf32, #tpu.memory_space<vmem>>, %arg7: memref<4x16xf32, #tpu.memory_space<vmem>>, %arg8: memref<4x8xf32, #tpu.memory_space<vmem>>, %arg9: memref<4x1xf32, #tpu.memory_space<vmem>>) attributes {dimension_semantics = [], scalar_prefetch = 0 : i64, scratch_operands = 0 : i64, tpu.core_type = #tpu.core_type<tc>} {
    %c0 = arith.constant 0 : index
    %c0_0 = arith.constant 0 : index
    %0 = vector.load %arg0[%c0, %c0_0] : memref<4x32xf32, #tpu.memory_space<vmem>>, vector<4x32xf32>
    %c0_1 = arith.constant 0 : index
    %c0_2 = arith.constant 0 : index
    %1 = vector.load %arg5[%c0_1, %c0_2] : memref<1x72xf32, #tpu.memory_space<vmem>>, vector<1x72xf32>
    %2 = vector.extract_strided_slice %1 {offsets = [0, 0], sizes = [1, 32], strides = [1, 1]} : vector<1x72xf32> to vector<1x32xf32>
    %3 = vector.extract_strided_slice %1 {offsets = [0, 32], sizes = [1, 32], strides = [1, 1]} : vector<1x72xf32> to vector<1x32xf32>
    %4 = vector.extract_strided_slice %1 {offsets = [0, 64], sizes = [1, 8], strides = [1, 1]} : vector<1x72xf32> to vector<1x8xf32>
    %c0_3 = arith.constant 0 : index
    %c0_4 = arith.constant 0 : index
    %5 = vector.load %arg2[%c0_3, %c0_4] : memref<32x32xf32, #tpu.memory_space<vmem>>, vector<32x32xf32>
    %cst = arith.constant dense<0.000000e+00> : vector<4x32xf32>
    %6 = tpu.matmul %0, %5, %cst {dimension_numbers = #tpu.dot_dimension_numbers<[1], [0], [0], [1], [0, 0, 1, 1], [], []>} : vector<4x32xf32>, vector<32x32xf32>, vector<4x32xf32> -> vector<4x32xf32>
    %7 = vector.broadcast %2 : vector<1x32xf32> to vector<4x32xf32>
    %8 = arith.addf %6, %7 : vector<4x32xf32>
    %cst_5 = arith.constant 0.000000e+00 : f32
    %9 = vector.broadcast %cst_5 : f32 to vector<4x32xf32>
    %10 = arith.maximumf %8, %9 : vector<4x32xf32>
    %c0_6 = arith.constant 0 : index
    %c0_7 = arith.constant 0 : index
    %11 = vector.load %arg3[%c0_6, %c0_7] : memref<32x32xf32, #tpu.memory_space<vmem>>, vector<32x32xf32>
    %cst_8 = arith.constant dense<0.000000e+00> : vector<4x32xf32>
    %12 = tpu.matmul %10, %11, %cst_8 {dimension_numbers = #tpu.dot_dimension_numbers<[1], [0], [0], [1], [0, 0, 1, 1], [], []>} : vector<4x32xf32>, vector<32x32xf32>, vector<4x32xf32> -> vector<4x32xf32>
    %13 = vector.broadcast %3 : vector<1x32xf32> to vector<4x32xf32>
    %14 = arith.addf %12, %13 : vector<4x32xf32>
    %15 = vector.extract_strided_slice %14 {offsets = [0, 0], sizes = [4, 16], strides = [1, 1]} : vector<4x32xf32> to vector<4x16xf32>
    %16 = vector.extract_strided_slice %14 {offsets = [0, 16], sizes = [4, 16], strides = [1, 1]} : vector<4x32xf32> to vector<4x16xf32>
    %cst_9 = arith.constant 5.700000e-01 : f32
    %17 = vector.broadcast %cst_9 : f32 to vector<4x16xf32>
    %18 = arith.addf %16, %17 : vector<4x16xf32>
    %cst_10 = arith.constant 0.000000e+00 : f32
    %19 = vector.broadcast %cst_10 : f32 to vector<4x16xf32>
    %20 = arith.maximumf %18, %19 : vector<4x16xf32>
    %21 = vector.broadcast %cst_10 : f32 to vector<4x16xf32>
    %22 = arith.subf %18, %21 : vector<4x16xf32>
    %23 = arith.cmpf one, %22, %22 : vector<4x16xf32>
    %24 = vector.broadcast %cst_10 : f32 to vector<4x16xf32>
    %25 = arith.addf %18, %24 : vector<4x16xf32>
    %26 = math.absf %22 : vector<4x16xf32>
    %cst_11 = arith.constant 0.000000e+00 : f32
    %27 = vector.broadcast %cst_11 : f32 to vector<4x16xf32>
    %28 = arith.subf %27, %26 : vector<4x16xf32>
    %29 = math.exp %28 : vector<4x16xf32>
    %30 = math.log1p %29 : vector<4x16xf32>
    %31 = arith.addf %20, %30 : vector<4x16xf32>
    %32 = arith.select %23, %25, %31 : vector<4x16xi1>, vector<4x16xf32>
    %c0_12 = arith.constant 0 : index
    %c0_13 = arith.constant 0 : index
    %33 = vector.load %arg1[%c0_12, %c0_13] : memref<4x16xf32, #tpu.memory_space<vmem>>, vector<4x16xf32>
    %34 = arith.mulf %33, %32 : vector<4x16xf32>
    %35 = arith.addf %15, %34 : vector<4x16xf32>
    %cst_14 = arith.constant 5.000000e-01 : f32
    %36 = vector.broadcast %cst_14 : f32 to vector<4x16xf32>
    %37 = arith.mulf %36, %33 : vector<4x16xf32>
    %38 = arith.mulf %37, %33 : vector<4x16xf32>
    %39 = math.log %32 : vector<4x16xf32>
    %40 = arith.addf %38, %39 : vector<4x16xf32>
    %cst_15 = arith.constant dense<0.000000e+00> : vector<4xf32>
    %41 = vector.multi_reduction <add>, %40, %cst_15 [1] : vector<4x16xf32> to vector<4xf32>
    %42 = vector.shape_cast %41 : vector<4xf32> to vector<4x1xf32>
    %cst_16 = arith.constant 6.28318548 : f32
    %43 = math.log %cst_16 : f32
    %cst_17 = arith.constant 8.000000e+00 : f32
    %44 = arith.mulf %cst_17, %43 : f32
    %45 = vector.broadcast %44 : f32 to vector<4x1xf32>
    %46 = arith.addf %42, %45 : vector<4x1xf32>
    %c0_18 = arith.constant 0 : index
    %c0_19 = arith.constant 0 : index
    %47 = vector.load %arg4[%c0_18, %c0_19] : memref<16x8xf32, #tpu.memory_space<vmem>>, vector<16x8xf32>
    %cst_20 = arith.constant dense<0.000000e+00> : vector<4x8xf32>
    %48 = tpu.matmul %35, %47, %cst_20 {dimension_numbers = #tpu.dot_dimension_numbers<[1], [0], [0], [1], [0, 0, 1, 1], [], []>} : vector<4x16xf32>, vector<16x8xf32>, vector<4x8xf32> -> vector<4x8xf32>
    %49 = vector.broadcast %4 : vector<1x8xf32> to vector<4x8xf32>
    %50 = arith.addf %48, %49 : vector<4x8xf32>
    %c0_21 = arith.constant 0 : index
    %c0_22 = arith.constant 0 : index
    %51 = vector.load %arg6[%c0_21, %c0_22] : memref<4x16xf32, #tpu.memory_space<vmem>>, vector<4x16xf32>
    tpu.vector_store %arg6[%c0_21, %c0_22], %15 {strides = array<i32>} : memref<4x16xf32, #tpu.memory_space<vmem>>, vector<4x16xf32>,
    %c0_23 = arith.constant 0 : index
    %c0_24 = arith.constant 0 : index
    %52 = vector.load %arg7[%c0_23, %c0_24] : memref<4x16xf32, #tpu.memory_space<vmem>>, vector<4x16xf32>
    tpu.vector_store %arg7[%c0_23, %c0_24], %32 {strides = array<i32>} : memref<4x16xf32, #tpu.memory_space<vmem>>, vector<4x16xf32>,
    %c0_25 = arith.constant 0 : index
    %c0_26 = arith.constant 0 : index
    %53 = vector.load %arg8[%c0_25, %c0_26] : memref<4x8xf32, #tpu.memory_space<vmem>>, vector<4x8xf32>
    tpu.vector_store %arg8[%c0_25, %c0_26], %50 {strides = array<i32>} : memref<4x8xf32, #tpu.memory_space<vmem>>, vector<4x8xf32>,
    %c0_27 = arith.constant 0 : index
    %c0_28 = arith.constant 0 : index
    %54 = vector.load %arg9[%c0_27, %c0_28] : memref<4x1xf32, #tpu.memory_space<vmem>>, vector<4x1xf32>
    tpu.vector_store %arg9[%c0_27, %c0_28], %46 {strides = array<i32>} : memref<4x1xf32, #tpu.memory_space<vmem>>, vector<4x1xf32>,
    return
  }
}

</mosaic_0001>

<bundles_post_ra>
// kernel: vib_forward.1
= control target key start
LH: loop header
LB: loop body
LE: loop exit
PB: predicated region body
PF: predicated region fallthrough
CT: control target
= control target key end

     0   :  { %15 = vsyncpa [#allocation3], 0  ;;  %s792_s0 = inlined_call_operand.hbm [shape: f32[4,32], index: 0, kind: input, shape index: {}]   ;;  %s793_s1 = inlined_call_operand.hbm [shape: f32[4,16], index: 1, kind: input, shape index: {}]   ;;  %s794_s2 = inlined_call_operand.hbm [shape: f32[32,32], index: 2, kind: input, shape index: {}]   ;;  %s795_s3 = inlined_call_operand.vmem [shape: f32[32,32], index: 3, kind: input, shape index: {}]   ;;  %s796_s4 = inlined_call_operand.vmem [shape: f32[16,8], index: 4, kind: input, shape index: {}]   ;;  %s797_s5 = inlined_call_operand.vmem [shape: f32[1,72], index: 5, kind: input, shape index: {}]   ;;  %s798_s6 = inlined_call_operand.hbm [shape: f32[4,16], index: 6, kind: output, shape index: {0}]   ;;  %s799_s7 = inlined_call_operand.hbm [shape: f32[4,16], index: 7, kind: output, shape index: {1}]   ;;  %s800_s8 = inlined_call_operand.hbm [shape: f32[4,8], index: 8, kind: output, shape index: {2}]   ;;  %s801_s9 = inlined_call_operand.vmem [shape: f32[4,1], index: 9, kind: output, shape index: {3}]  }
   0x1   :  { %16 = vsyncpa [#allocation6], 0 }
   0x2   :  { %17 = vsyncpa [#allocation4], 0 }
   0x3   :  { %18 = vsyncpa [#allocation10], 0  ;;  %s626_s30 = smov [#allocation5]   ;;  %s627_s11 = smov [#allocation2]  }
   0x4   :  { %s35_s10 = sshll.u32 %s626_s30, 4  ;;  %s25_s12 = sshll.u32 %s627_s11, 4  ;;  %s36_s10 = int_to_ptr.vmem [resolvable:$true] %s35_s10  ;;  %s26_s12 = int_to_ptr.vmem [resolvable:$true] %s25_s12 }
   0x5   :  { %s486_s15 = scalar_lea.hbm %s793_s1, 64 }
   0x6   :  { %p487_p0 = scmp.ne.s32.totalorder %s793_s1, %s486_s15  ;;  %p490_p1 = scmp.lt.u32.totalorder %s486_s15, %s793_s1 }
   0x8   :  { %p492_p2 = pnand %p490_p1, %p487_p0 }
   0xa   :  { %495 = shalt.err (!%p492_p2)
}
   0xb   :  { %s496_s20 = scalar_lea.vmem %s36_s10, 64  ;;  %p501_p4 = scmp.lt.s32.totalorder %s36_s10, %s36_s10 }
   0xc   :  { %p497_p3 = scmp.ne.s32.totalorder %s36_s10, %s496_s20  ;;  %p502_p5 = scmp.lt.s32.totalorder %s496_s20, %s496_s20 }
   0xe   :  { %p503_p6 = por %p502_p5, %p501_p4 }
  0x10   :  { %p504_p7 = pnand %p503_p6, %p497_p3 }
  0x12   :  { %507 = shalt.err (!%p504_p7)
}
  0x13   :  { %38 = dma.hbm_to_vmem [thread:$0]  %s793_s1, 64, %s36_s10, [#allocation6]  }
  0x14   :  { %s508_s25 = scalar_lea.hbm %s792_s0, 64 }
  0x15   :  { %p509_p8 = scmp.ne.s32.totalorder %s792_s0, %s508_s25  ;;  %p512_p9 = scmp.lt.u32.totalorder %s508_s25, %s792_s0 }
  0x17   :  { %p514_p10 = pnand %p512_p9, %p509_p8 }
  0x19   :  { %517 = shalt.err (!%p514_p10)
}
  0x1a   :  { %s518_s30 = scalar_lea.vmem %s26_s12, 64  ;;  %p523_p12 = scmp.lt.s32.totalorder %s26_s12, %s26_s12 }
  0x1b   :  { %p519_p11 = scmp.ne.s32.totalorder %s26_s12, %s518_s30  ;;  %p524_p13 = scmp.lt.s32.totalorder %s518_s30, %s518_s30 }
  0x1d   :  { %p525_p0 = por %p524_p13, %p523_p12 }
  0x1f   :  { %p526_p1 = pnand %p525_p0, %p519_p11 }
  0x21   :  { %529 = shalt.err (!%p526_p1)
}
  0x22   :  { %28 = dma.hbm_to_vmem [thread:$0]  %s792_s0, 64, %s26_s12, [#allocation3]  }
  0x23   :  { %s628_s11 = smov [#allocation7]   ;;  %s530_s16 = scalar_lea.hbm %s794_s2, 512 }
  0x24   :  { %s44_s13 = sshll.u32 %s628_s11, 4  ;;  %p531_p2 = scmp.ne.s32.totalorder %s794_s2, %s530_s16  ;;  %s45_s13 = int_to_ptr.vmem [resolvable:$true] %s44_s13 }
  0x25   :  { %p534_p3 = scmp.lt.u32.totalorder %s530_s16, %s794_s2 }
  0x27   :  { %p536_p4 = pnand %p534_p3, %p531_p2 }
  0x29   :  { %539 = shalt.err (!%p536_p4)
}
  0x2a   :  { %s540_s21 = scalar_lea.vmem %s45_s13, 512  ;;  %p545_p6 = scmp.lt.s32.totalorder %s45_s13, %s45_s13 }
  0x2b   :  { %p541_p5 = scmp.ne.s32.totalorder %s45_s13, %s540_s21  ;;  %p546_p7 = scmp.lt.s32.totalorder %s540_s21, %s540_s21 }
  0x2d   :  { %p547_p8 = por %p546_p7, %p545_p6 }
  0x2f   :  { %p548_p9 = pnand %p547_p8, %p541_p5 }
  0x31   :  { %551 = shalt.err (!%p548_p9)
}
  0x32   :  { %s629_s0 = smov 128   ;;  %s630_s12 = smov 8  }
  0x33   :  { %50 = dma.hbm_to_vmem [thread:$0]  %s794_s2, 512, %s45_s13, [#allocation6], %s629_s0, %s629_s0, %s630_s12  }
  0x34   :  { %618 = dma.done.wait [#allocation3], 64  }
  0x35   :  { %619 = vsyncadd [#allocation3], 4294967232 }
  0x36   :  { %620 = dma.done.wait [#allocation6], 576  }
  0x37   :  { %621 = vsyncadd [#allocation6], 4294966720  ;;  %v631_v0 = vmov 0.0|0.0   ;;  %vm632_vm0 = vmmov 0   ;;  %v633_v1 = vmov 0.0   ;;  %v68_v2 = vld [vmem:[#allocation7] sm:$0xff] }
  0x38   :  { %451 = vmatprep.subr.bf16.mxu0 %v631_v0  ;;  %430 = vmatprep.mubr.msk.f32.mxu0 %vm632_vm0, %v633_v1  ;;  %v69_v3 = vld [vmem:[#allocation7 + $0x8] sm:$0xff]  ;;  %v70_v4 = vld [vmem:[#allocation7 + $0x10] sm:$0xff]  ;;  %v71_v6 = vld [vmem:[#allocation7 + $0x18] sm:$0xff]  ;;  %vm78_vm1 = vcmask 261120   ;;  %s634_s11 = smov 96   ;;  %vm268_vm2 = vcmask 125952  }
  0x39   :  { %457 = vmatprep.subr.bf16.mxu1 %v631_v0  ;;  %441 = vmatprep.mubr.msk.f32.mxu1 %vm632_vm0, %v633_v1  ;;  %v452_v5 = vpack.c.bf16 %v69_v3, %v68_v2  ;;  %v153_v7 = vld [vmem:[%s795_s3] sm:$0xff]  ;;  %v154_v8 = vld [vmem:[%s795_s3 + $0x8] sm:$0xff]  ;;  %v455_v9 = vpack.c.bf16 %v71_v6, %v70_v4  ;;  %v155_v12 = vld [vmem:[%s795_s3 + $0x10] sm:$0xff]  ;;  %s635_s15 = smov 112   ;;  %s636_s16 = smov 64   ;;  %vm278_vm5 = vcmask 130048  }
  0x3a   :  { %v458_v10 = vpack.c.bf16 %v154_v8, %v153_v7  ;;  %v66_v11 = vld [vmem:[#allocation2] sm:$0xf]  ;;  %v156_v13 = vld [vmem:[%s795_s3 + $0x18] sm:$0xff]  ;;  %v274_v31 = vld [vmem:[%s796_s4 + $0x8] sm:$0xff]  ;;  %s638_s18 = smov [#allocation8]  }
  0x3b   :  { %453 = vmatpush3.bf16.msra.mxu0 %v452_v5  ;;  %v461_v14 = vpack.c.bf16 %v156_v13, %v155_v12  ;;  %v405_v15 = vld [vmem:[%s797_s5] ss:$0 sm:$0xff]  ;;  %v252_v45 = vld [vmem:[#allocation5] sm:$0xf]  ;;  %s364_s19 = sshll.u32 %s638_s18, 4  ;;  %s365_s19 = int_to_ptr.vmem [resolvable:$true] %s364_s19 }
  0x3c   :  { %454 = vmatprep.subr.bf16.mxu0 %v631_v0  ;;  %459 = vmatpush3.bf16.msra.mxu1 %v458_v10  ;;  %v273_v30 = vld [vmem:[%s796_s4] sm:$0xff]  ;;  %v259_v49 = vmul.f32 0.5, %v252_v45  ;;  %s637_s4 = smov [#allocation9]  }
  0x3d   :  { %460 = vmatprep.subr.bf16.mxu1 %v631_v0  ;;  %157 = vrot.lane.b32.xlu0 %v405_v15, %s634_s11  ;;  %v464_v33 = vpack.c.bf16 %v274_v31, %v273_v30  ;;  %s374_s17 = sshll.u32 %s637_s4, 4  ;;  %s375_s17 = int_to_ptr.vmem [resolvable:$true] %s374_s17 }
  0x3e   :  { %v260_v50 = vmul.f32 %v259_v49, %v252_v45  ;;  %s552_s20 = scalar_lea.vmem %s375_s17, 64  ;;  %p557_p11 = scmp.lt.s32.totalorder %s375_s17, %s375_s17 }
  0x3f   :  { %456 = vmatpush3.bf16.msra.mxu0 %v455_v9  ;;  %p553_p10 = scmp.ne.s32.totalorder %s375_s17, %s552_s20  ;;  %p558_p12 = scmp.lt.s32.totalorder %s552_s20, %s552_s20 }
  0x40   :  { %463 = vmatprep.subr.bf16.mxu0 %v631_v0  ;;  %462 = vmatpush3.bf16.msra.mxu1 %v461_v14 }
  0x41   :  { %p559_p13 = por %p558_p12, %p557_p11 }
  0x42   :  { %431 = vmatmul.mubr.msk.f32.vlgmr.msra.gmra.mrb[0].mxu0 %vm78_vm1, %v66_v11 }
  0x43   :  { %448 = vmatprep.mubr.msk.f32.mxu0 %vm632_vm0, %v633_v1  ;;  %465 = vmatpush3.bf16.msra.mxu0 %v464_v33  ;;  %p560_p0 = pnand %p559_p13, %p553_p10 }
  0xaf   :  { %v158_v20 = vpop.permute.xlu0 %157 }
 0x115   :  { %v148_v16 = vpop.f32.mrb[0].mxu0 }
 0x116   :  { %v149_v17 = vadd.f32 %v405_v15, %v148_v16  ;;  %v432_v18 = vpop.f32.mrb[1].mxu0 }
 0x118   :  { %v152_v19 = vmax.f32 %v149_v17, 0.0 }
 0x11a   :  { %442 = vmatmul.mubr.msk.f32.vlgmr.msra.gmra.mrb[0].mxu1 %vm78_vm1, %v152_v19 }
 0x1ed   :  { %v229_v21 = vpop.f32.mrb[0].mxu1 }
 0x1ee   :  { %v230_v22 = vadd.f32 %v229_v21, %v158_v20  ;;  %v443_v23 = vpop.f32.mrb[1].mxu1 }
 0x1f0   :  { %v233_v24 = vadd.f32 0.57, %v230_v22  ;;  %352 = vst.msk [vmem:[#allocation8] sm:$0xf] %vm268_vm2, %v230_v22 }
 0x1f2   :  { %v237_v25 = vand.u32 2147483647, %v233_v24  ;;  %v234_v39 = vmax.f32 %v233_v24, 0.0  ;;  %vm235_vm4 = vcmp.ne.f32.partialorder %v233_v24, %v233_v24 }
 0x1f4   :  { %v238_v26 = vsub.f32 0.0, %v237_v25 }
 0x1f6   :  { %v239_v27 = vmul.f32 1.442695, %v238_v26 }
 0x1f8   :  { %480 = vpow2.f32 %v239_v27 }
 0x202   :  { %v481_v28 = vpop.eup %480 }
 0x203   :  { %v241_v29 = vadd.f32 1.0, %v481_v28  ;;  %v244_v32 = vmul.f32 -0.5, %v481_v28  ;;  %v247_v35 = vand.u32 2147483647, %v481_v28 }
 0x205   :  { %482 = vlog2.f32 %v241_v29  ;;  %v245_v34 = vadd.f32 1.0, %v244_v32  ;;  %vm248_vm3 = vcmp.lt.f32.partialorder %v247_v35, 0.0004427343 }
 0x207   :  { %v246_v38 = vmul.f32 %v481_v28, %v245_v34 }
 0x20f   :  { %v483_v36 = vpop.eup %482 }
 0x210   :  { %v243_v37 = vmul.f32 0.6931472, %v483_v36 }
 0x212   :  { %v249_v40 = vsel %vm248_vm3, %v246_v38, %v243_v37 }
 0x213   :  { %v250_v41 = vadd.f32 %v249_v40, %v234_v39 }
 0x215   :  { %v251_v42 = vsel %vm235_vm4, %v233_v24, %v250_v41 }
 0x216   :  { %254 = vrot.lane.b32.xlu0 %v251_v42, %s635_s15  ;;  %484 = vlog2.f32 %v251_v42 }
 0x21a   :  { %275 = vrot.lane.b32.xlu0 %v405_v15, %s636_s16 }
 0x220   :  { %v485_v43 = vpop.eup %484 }
 0x221   :  { %v262_v44 = vmul.f32 0.6931472, %v485_v43 }
 0x223   :  { %264 = vrot.lane.b32.xlu1 %v262_v44, %s635_s15 }
 0x288   :  { %v255_v46 = vpop.permute.xlu0 %254 }
 0x289   :  { %v257_v47 = vmul.f32 %v255_v46, %v252_v45  ;;  %353 = vst.msk [vmem:[#allocation9] sm:$0xf] %vm268_vm2, %v255_v46 }
 0x28b   :  { %v258_v48 = vadd.f32 %v257_v47, %v230_v22 }
 0x28d   :  { %449 = vmatmul.mubr.msk.f32.vlgmr.msra.gmra.mrb[2].mxu0 %vm278_vm5, %v258_v48 }
 0x295   :  { %v265_v51 = vpop.permute.xlu1 %264 }
 0x296   :  { %v267_v52 = vadd.f32 %v265_v51, %v260_v50 }
 0x298   :  { %v269_v53 = vsel %vm268_vm2, %v267_v52, 0.0 }
 0x299   :  { %270 = vadd.xlane.f32.xlu1 %v269_v53 }
 0x29a   :  { %563 = shalt.err (!%p560_p0)
}
 0x29b   :  { %s564_s12 = scalar_lea.hbm %s799_s7, 64 }
 0x29c   :  { %p565_p1 = scmp.ne.s32.totalorder %s799_s7, %s564_s12  ;;  %p568_p2 = scmp.lt.u32.totalorder %s564_s12, %s799_s7 }
 0x29e   :  { %p570_p3 = pnand %p568_p2, %p565_p1 }
 0x2a0   :  { %573 = shalt.err (!%p570_p3)
}
 0x2a1   :  { %377 = dma.vmem_to_hbm [thread:$0]  %s375_s17, 64, %s799_s7, [#allocation10]  }
 0x2a2   :  { %s574_s27 = scalar_lea.vmem %s365_s19, 64  ;;  %p579_p5 = scmp.lt.s32.totalorder %s365_s19, %s365_s19 }
 0x2a3   :  { %p575_p4 = scmp.ne.s32.totalorder %s365_s19, %s574_s27  ;;  %p580_p6 = scmp.lt.s32.totalorder %s574_s27, %s574_s27 }
 0x2a5   :  { %p581_p7 = por %p580_p6, %p579_p5 }
 0x2a7   :  { %p582_p8 = pnand %p581_p7, %p575_p4 }
 0x2a9   :  { %585 = shalt.err (!%p582_p8)
}
 0x2aa   :  { %s586_s30 = scalar_lea.hbm %s798_s6, 64 }
 0x2ab   :  { %p587_p9 = scmp.ne.s32.totalorder %s798_s6, %s586_s30  ;;  %p590_p10 = scmp.lt.u32.totalorder %s586_s30, %s798_s6 }
 0x2ad   :  { %p592_p11 = pnand %p590_p10, %p587_p9 }
 0x2af   :  { %595 = shalt.err (!%p592_p11)
}
 0x2b0   :  { %367 = dma.vmem_to_hbm [thread:$0]  %s365_s19, 64, %s798_s6, [#allocation4]   ;;  %vm356_vm6 = vcmask 3072   ;;  %v276_v56 = vpop.permute.xlu0 %275  ;;  %vm354_vm7 = vcmask 60416  }
 0x2b1   :  { %s639_s15 = smov [#allocation11]  }
 0x2b2   :  { %s384_s16 = sshll.u32 %s639_s15, 4  ;;  %s385_s16 = int_to_ptr.vmem [resolvable:$true] %s384_s16 }
 0x2b3   :  { %s596_s4 = scalar_lea.vmem %s385_s16, 64  ;;  %p601_p13 = scmp.lt.s32.totalorder %s385_s16, %s385_s16 }
 0x2b4   :  { %p597_p12 = scmp.ne.s32.totalorder %s385_s16, %s596_s4  ;;  %p602_p0 = scmp.lt.s32.totalorder %s596_s4, %s596_s4 }
 0x2b6   :  { %p603_p1 = por %p602_p0, %p601_p13 }
 0x2b8   :  { %p604_p2 = pnand %p603_p1, %p597_p12 }
 0x326   :  { %v271_v54 = vpop.xlane.xlu1 %270 }
 0x327   :  { %v272_v55 = vadd.f32 14.703016, %v271_v54 }
 0x329   :  { %357 = vst.msk [vmem:[%s801_s9] sm:$0xf] %vm356_vm6, %v272_v55 }
 0x360   :  { %v348_v57 = vpop.f32.mrb[2].mxu0 }
 0x361   :  { %v349_v58 = vadd.f32 %v348_v57, %v276_v56  ;;  %v450_v59 = vpop.f32.mrb[3].mxu0 }
 0x363   :  { %355 = vst.msk [vmem:[#allocation11] sm:$0xf] %vm354_vm7, %v349_v58 }
 0x364   :  { %607 = shalt.err (!%p604_p2)
}
 0x365   :  { %s608_s9 = scalar_lea.hbm %s800_s8, 64 }
 0x366   :  { %p609_p3 = scmp.ne.s32.totalorder %s800_s8, %s608_s9  ;;  %p612_p4 = scmp.lt.u32.totalorder %s608_s9, %s800_s8 }
 0x368   :  { %p614_p5 = pnand %p612_p4, %p609_p3 }
 0x36a   :  { %617 = shalt.err (!%p614_p5)
}
 0x36b   :  { %387 = dma.vmem_to_hbm [thread:$0]  %s385_s16, 64, %s800_s8, [#allocation10]  }
 0x36c   :  { %622 = dma.done.wait [#allocation4], 64  }
 0x36d   :  { %623 = vsyncadd [#allocation4], 4294967232 }
 0x36e   :  { %624 = dma.done.wait [#allocation10], 128  }
 0x36f   :  { %625 = vsyncadd [#allocation10], 4294967168 }
 0x370   :  { %401 = vsyncpa [#allocation3], 1 }
 0x371   :  { %402 = vsyncpa [#allocation6], 1 }
 0x372   :  { %403 = vsyncpa [#allocation4], 1 }
 0x373   :  { %404 = vsyncpa [#allocation10], 1 }

</bundles_post_ra>
